<compile_context>
chip_gen: v7x
topology: tpu7x:2x2x1
jax: 0.10.0
libtpu: 0.0.40
codegen_flags: <defaults>
</compile_context>

<pallas_src>
import jax
import jax.numpy as jnp
from jax.experimental import pallas as pl
from jax.experimental.pallas import tpu as pltpu


_MIB = 1024 * 1024
_MIN_LANE_HW = 128            # below this, lanes are badly underutilized -> XLA path
_BUDGET_CACHE = None


def _vmem_budget():
    """Return (per-array block bytes at f32 sizing, vmem_limit_bytes), generation-aware."""
    global _BUDGET_CACHE
    if _BUDGET_CACHE is not None:
        return _BUDGET_CACHE
    try:
        vmem_cap = int(pltpu.get_tpu_info().vmem_capacity_bytes)
    except Exception:
        vmem_cap = None
    if vmem_cap is None:
        # Unknown generation: conservative sizing that is safe everywhere (incl. v7x).
        budget = (2 * _MIB, 32 * _MIB)
    elif vmem_cap <= 64 * _MIB:
        # v7x: 64 MiB physical per TensorCore.  3 streams x 2 buffers x 4 MiB = 24 MiB
        # of DMA buffers plus ~12 MiB of f32 compute temps stays well under 48 MiB.
        budget = (4 * _MIB, 48 * _MIB)
    else:
        # v5e / v6e: 128 MiB physical.  Raise the scoped limit above the 16/32 MiB
        # defaults explicitly so larger blocks never trip a silent fallback / OOM.
        budget = (4 * _MIB, 64 * _MIB)
    _BUDGET_CACHE = budget
    return budget


def _sublane_multiple(dtype) -> int:
    """Second-minor tiling unit: 8 for 32-bit, 16 for bf16/f16, 32 for 8-bit dtypes."""
    return max(8, 32 // jnp.dtype(dtype).itemsize)


def _row_tile(rows: int, hw: int, dtype, block_bytes: int) -> int:
    """Pick a row tile so each (TR, HW) block is ~block_bytes.

    Sized on max(itemsize, 4) because src/tgt/e are held as f32 inside the kernel.
    Rounded to the dtype sublane multiple.  If everything fits in one block, the
    row axis is still split into >=2 blocks (when legal) so the "parallel" grid
    axis shards across v7x's two TensorCores.
    """
    sub = _sublane_multiple(dtype)
    sizing_itemsize = max(jnp.dtype(dtype).itemsize, 4)   # f32 upcast temps dominate
    tr = block_bytes // max(1, hw * sizing_itemsize)
    tr = max(sub, (tr // sub) * sub)
    if tr >= rows:
        if rows >= 2 * sub:
            half = -(-rows // 2)                          # ceil(rows / 2)
            tr_split = ((half + sub - 1) // sub) * sub
            if tr_split < rows:
                return tr_split                           # -> exactly 2 grid steps
        return rows                                       # tiny level: one full block
    return tr


def _dfs_rows_kernel(src_ref, tgt_ref, theta_ref, out_ref):
    """Row-tiled DFS: each row is one (batch, channel) pair; lanes hold HW."""
    src = src_ref[...].astype(jnp.float32)       # (TR, HW)
    tgt = tgt_ref[...].astype(jnp.float32)       # (TR, HW)
    theta = theta_ref[...].astype(jnp.float32)   # (TR, 1): clamp(sigmoid(.)+0.5, 1), hoisted

    # Stable softmax over HW (lane axis).  Subtracting the row max matches the
    # reference exactly for both maximize=True and maximize=False.
    x = tgt - jnp.max(tgt, axis=-1, keepdims=True)
    e = jnp.exp(x)
    inv = pl.reciprocal(jnp.sum(e, axis=-1, keepdims=True), approx=False)
    global_inf = jnp.mean(tgt, axis=-1, keepdims=True)   # (TR, 1)

    # Fold the per-row scalars first: one fewer full-block VPU multiply than
    # out = src * ((e*inv) * (theta+gi)), and `weights` is never materialized.
    s = (theta + global_inf) * inv                        # (TR, 1)
    out_ref[...] = (src * e * s).astype(out_ref.dtype)


def _dfs_rows_kernel_no_theta(src_ref, tgt_ref, out_ref):
    """learnable=False variant: theta == 1 constant, no theta DMA at all."""
    src = src_ref[...].astype(jnp.float32)
    tgt = tgt_ref[...].astype(jnp.float32)
    x = tgt - jnp.max(tgt, axis=-1, keepdims=True)
    e = jnp.exp(x)
    inv = pl.reciprocal(jnp.sum(e, axis=-1, keepdims=True), approx=False)
    global_inf = jnp.mean(tgt, axis=-1, keepdims=True)
    s = (1.0 + global_inf) * inv
    out_ref[...] = (src * e * s).astype(out_ref.dtype)


def _dfs_level_xla(source_feature, target_feature, theta_c):
    """Fused pure-JAX path for small-HW levels (HW < 128 lanes => masked stores in Pallas)."""
    b, c, h, w = source_feature.shape
    src = source_feature.astype(jnp.float32)
    tgt = target_feature.astype(jnp.float32)
    flat = tgt.reshape(b, c, -1)
    flat = flat - jnp.max(flat, axis=-1, keepdims=True)
    e = jnp.exp(flat)
    inv = 1.0 / jnp.sum(e, axis=-1, keepdims=True)
    gi = jnp.mean(tgt, axis=(-2, -1), keepdims=True)            # (b, c, 1, 1)
    theta = theta_c.reshape(1, c, 1, 1) if theta_c is not None else 1.0
    s = (theta + gi) * inv.reshape(b, c, 1, 1)
    out = src * e.reshape(b, c, h, w) * s
    return out.astype(source_feature.dtype)


def _dfs_level(source_feature, target_feature, theta_param, *, learnable: bool, maximize: bool = True):
    """Run DFS for a single NCHW feature level."""
    del maximize  # Stable softmax in-kernel yields the identical result for both paths.
    b, c, h, w = source_feature.shape
    hw = h * w
    rows = b * c
    itemsize = jnp.dtype(source_feature.dtype).itemsize

    # Hoist the grid-invariant theta transform out of the kernel (runs once, not per step).
    theta_c = None
    if learnable:
        theta_c = jnp.minimum(
            jax.nn.sigmoid(theta_param.reshape(c).astype(jnp.float32)) + 0.5, 1.0
        )

    # Small-HW pyramid levels: lanes would be <128/128 live and stores masked;
    # per-step + launch overhead dominates.  Route to fused XLA instead.
    if hw < _MIN_LANE_HW:
        return _dfs_level_xla(source_feature, target_feature, theta_c)

    block_bytes, vmem_limit = _vmem_budget()
    tr = _row_tile(rows, hw, source_feature.dtype, block_bytes)
    grid = (pl.cdiv(rows, tr),)

    src2d = source_feature.reshape(rows, hw)
    tgt2d = target_feature.reshape(rows, hw)

    row_spec = pl.BlockSpec((tr, hw), lambda i: (i, 0))
    out_shape = jax.ShapeDtypeStruct((rows, hw), source_feature.dtype)
    compiler_params = pltpu.CompilerParams(
        dimension_semantics=("parallel",),
        vmem_limit_bytes=vmem_limit,
    )
    cost = pl.CostEstimate(
        flops=6 * rows * hw,
        transcendentals=rows * hw,
        bytes_accessed=3 * rows * hw * itemsize + rows * 4,
    )

    if learnable:
        theta_rows = jnp.broadcast_to(theta_c[None, :], (b, c)).reshape(rows, 1)
        out2d = pl.pallas_call(
            _dfs_rows_kernel,
            out_shape=out_shape,
            grid_spec=pltpu.PrefetchScalarGridSpec(
                num_scalar_prefetch=0,
                grid=grid,
                in_specs=[row_spec, row_spec, pl.BlockSpec((tr, 1), lambda i: (i, 0))],
                out_specs=row_spec,
            ),
            compiler_params=compiler_params,
            cost_estimate=cost,
        )(src2d, tgt2d, theta_rows)
    else:
        out2d = pl.pallas_call(
            _dfs_rows_kernel_no_theta,
            out_shape=out_shape,
            grid_spec=pltpu.PrefetchScalarGridSpec(
                num_scalar_prefetch=0,
                grid=grid,
                in_specs=[row_spec, row_spec],
                out_specs=row_spec,
            ),
            compiler_params=compiler_params,
            cost_estimate=cost,
        )(src2d, tgt2d)

    return out2d.reshape(b, c, h, w)


class DomainRelatedFeatureSelection:
    """JAX/Pallas port of anomalib's DomainRelatedFeatureSelection (conv=False path)."""

    def __init__(self, num_channels: int = 256, learnable: bool = True, key=None):
        self.num_channels = num_channels
        self.learnable = learnable
        if key is None:
            key = jax.random.PRNGKey(0)
        k1, k2, k3 = jax.random.split(key, 3)
        # PyTorch initializes thetas to zeros (theta==1 after sigmoid/clamp); small
        # random values here so the theta path is exercised numerically.
        self.theta1 = 0.1 * jax.random.normal(k1, (1, num_channels, 1, 1), jnp.float32)
        self.theta2 = 0.1 * jax.random.normal(k2, (1, num_channels * 2, 1, 1), jnp.float32)
        self.theta3 = 0.1 * jax.random.normal(k3, (1, num_channels * 4, 1, 1), jnp.float32)

    def _get_theta(self, idx: int):
        if idx == 1:
            return self.theta1
        if idx == 2:
            return self.theta2
        if idx == 3:
            return self.theta3
        raise ValueError(f"Invalid index: {idx}")

    def __call__(self, source_features, target_features, conv: bool = False, maximize: bool = True):
        if conv:
            # TODO(synk): conv=True branch is a no-op in the reference forward (no features appended);
            # only the conv=False path is implemented here.
            return []
        features = []
        for idx, (src, tgt) in enumerate(zip(source_features, target_features)):
            if self.learnable:
                theta_idx = idx + 1 if idx < 3 else idx - 2
                theta_param = self._get_theta(theta_idx)
            else:
                theta_param = None  # learnable=False: no dead theta DMA in the kernel
            features.append(
                _dfs_level(src, tgt, theta_param, learnable=self.learnable, maximize=maximize)
            )
        return features


def _reference_level(src, tgt, theta_param, *, maximize: bool, learnable: bool):
    """Pure-JAX reference mirroring the PyTorch forward for one level."""
    b, c, h, w = src.shape
    theta = jnp.minimum(jax.nn.sigmoid(theta_param) + 0.5, 1.0) if learnable else 1.0
    prior_flat = tgt.reshape(b, c, -1)
    if maximize:
        prior_flat = prior_flat - jnp.max(prior_flat, axis=-1, keepdims=True)
    weights = jax.nn.softmax(prior_flat, axis=-1).reshape(b, c, h, w)
    global_inf = jnp.mean(tgt, axis=(-2, -1), keepdims=True)
    return src * (weights * (theta + global_inf))


if __name__ == "__main__":
    key = jax.random.PRNGKey(0)
    k_params, k_data, k_med = jax.random.split(key, 3)

    num_channels = 4
    B = 2
    # Three pyramid levels: channels double, spatial halves (as in uninet backbones).
    # Level 0 (hw=256) takes the Pallas path; levels 1/2 (hw=64, 16) take the XLA path.
    level_shapes = [
        (B, num_channels, 16, 16),
        (B, num_channels * 2, 8, 8),
        (B, num_channels * 4, 4, 4),
    ]

    keys = jax.random.split(k_data, 2 * len(level_shapes))
    source_features = [
        jax.random.normal(keys[2 * i], shp, jnp.float32) for i, shp in enumerate(level_shapes)
    ]
    target_features = [
        jax.random.normal(keys[2 * i + 1], shp, jnp.float32) for i, shp in enumerate(level_shapes)
    ]

    dfs = DomainRelatedFeatureSelection(num_channels=num_channels, learnable=True, key=k_params)

    # --- learnable=True, maximize=True ---
    outs = dfs(source_features, target_features, conv=False, maximize=True)
    outs = [jax.block_until_ready(o) for o in outs]
    for idx, (src, tgt, out) in enumerate(zip(source_features, target_features, outs)):
        theta_idx = idx + 1 if idx < 3 else idx - 2
        ref = _reference_level(src, tgt, dfs._get_theta(theta_idx), maximize=True, learnable=True)
        assert out.shape == src.shape and out.dtype == src.dtype
        assert jnp.allclose(out, ref, atol=1e-5, rtol=1e-5), f"mismatch at level {idx} (maximize=True)"

    # --- maximize=False path (softmax without the explicit pre-subtraction) ---
    outs_nm = dfs(source_features, target_features, conv=False, maximize=False)
    outs_nm = [jax.block_until_ready(o) for o in outs_nm]
    for idx, (src, tgt, out) in enumerate(zip(source_features, target_features, outs_nm)):
        theta_idx = idx + 1 if idx < 3 else idx - 2
        ref = _reference_level(src, tgt, dfs._get_theta(theta_idx), maximize=False, learnable=True)
        assert jnp.allclose(out, ref, atol=1e-5, rtol=1e-5), f"mismatch at level {idx} (maximize=False)"

    # --- learnable=False path (theta input dropped from the kernel) ---
    dfs_nl = DomainRelatedFeatureSelection(num_channels=num_channels, learnable=False, key=k_params)
    outs_nl = dfs_nl(source_features, target_features, conv=False, maximize=True)
    outs_nl = [jax.block_until_ready(o) for o in outs_nl]
    for idx, (src, tgt, out) in enumerate(zip(source_features, target_features, outs_nl)):
        ref = _reference_level(src, tgt, None, maximize=True, learnable=False)
        assert jnp.allclose(out, ref, atol=1e-5, rtol=1e-5), f"mismatch at level {idx} (learnable=False)"

    # --- medium level: exercises the >=2-step "parallel" grid (megacore split) ---
    Cm = 32
    km1, km2, km3 = jax.random.split(k_med, 3)
    src_m = jax.random.normal(km1, (B, Cm, 16, 16), jnp.float32)
    tgt_m = jax.random.normal(km2, (B, Cm, 16, 16), jnp.float32)
    theta_m = 0.1 * jax.random.normal(km3, (1, Cm, 1, 1), jnp.float32)
    out_m = jax.block_until_ready(_dfs_level(src_m, tgt_m, theta_m, learnable=True, maximize=True))
    ref_m = _reference_level(src_m, tgt_m, theta_m, maximize=True, learnable=True)
    assert jnp.allclose(out_m, ref_m, atol=1e-5, rtol=1e-5), "mismatch on medium level"

    # --- bf16 I/O (halves HBM traffic; f32 compute in-kernel; 16-row sublane rounding) ---
    src_bf16 = src_m.astype(jnp.bfloat16)
    tgt_bf16 = tgt_m.astype(jnp.bfloat16)
    out_bf16 = jax.block_until_ready(
        _dfs_level(src_bf16, tgt_bf16, theta_m, learnable=True, maximize=True)
    )
    ref_bf16 = _reference_level(
        src_bf16.astype(jnp.float32), tgt_bf16.astype(jnp.float32), theta_m,
        maximize=True, learnable=True,
    )
    assert out_bf16.dtype == jnp.bfloat16
    assert jnp.allclose(out_bf16.astype(jnp.float32), ref_bf16, atol=2e-3, rtol=2e-2), "bf16 mismatch"

    print("KERNEL_OK")
</pallas_src>

<mosaic_0001>
module attributes {stable_mosaic.version = 11 : i64} {
  func.func @_dfs_rows_kernel(%arg0: i32, %arg1: memref<8x256xf32, #tpu.memory_space<vmem>>, %arg2: memref<8x256xf32, #tpu.memory_space<vmem>>, %arg3: memref<8x1xf32, #tpu.memory_space<vmem>>, %arg4: memref<8x256xf32, #tpu.memory_space<vmem>>) attributes {dimension_semantics = [#tpu.dimension_semantics<parallel>], iteration_bounds = array<i64: 1>, scalar_prefetch = 0 : i64, scratch_operands = 0 : i64, tpu.core_type = #tpu.core_type<tc>, window_params = [{transform_indices = @transform_0, window_bounds = array<i64: 8, 256>}, {transform_indices = @transform_1, window_bounds = array<i64: 8, 256>}, {transform_indices = @transform_2, window_bounds = array<i64: 8, 1>}, {transform_indices = @transform_3, window_bounds = array<i64: 8, 256>}]} {
    %c0 = arith.constant 0 : index
    %c0_0 = arith.constant 0 : index
    %0 = vector.load %arg1[%c0, %c0_0] : memref<8x256xf32, #tpu.memory_space<vmem>>, vector<8x256xf32>
    %c0_1 = arith.constant 0 : index
    %c0_2 = arith.constant 0 : index
    %1 = vector.load %arg2[%c0_1, %c0_2] : memref<8x256xf32, #tpu.memory_space<vmem>>, vector<8x256xf32>
    %c0_3 = arith.constant 0 : index
    %c0_4 = arith.constant 0 : index
    %2 = vector.load %arg3[%c0_3, %c0_4] : memref<8x1xf32, #tpu.memory_space<vmem>>, vector<8x1xf32>
    %cst = arith.constant dense<0xFF800000> : vector<8xf32>
    %3 = vector.multi_reduction <maximumf>, %1, %cst [1] : vector<8x256xf32> to vector<8xf32>
    %4 = vector.shape_cast %3 : vector<8xf32> to vector<8x1xf32>
    %5 = vector.broadcast %4 : vector<8x1xf32> to vector<8x256xf32>
    %6 = arith.subf %1, %5 : vector<8x256xf32>
    %7 = math.exp %6 : vector<8x256xf32>
    %cst_5 = arith.constant dense<0.000000e+00> : vector<8xf32>
    %8 = vector.multi_reduction <add>, %7, %cst_5 [1] : vector<8x256xf32> to vector<8xf32>
    %9 = vector.shape_cast %8 : vector<8xf32> to vector<8x1xf32>
    %10 = tpu.reciprocal %9 : vector<8x1xf32> -> vector<8x1xf32>
    %cst_6 = arith.constant dense<0.000000e+00> : vector<8xf32>
    %11 = vector.multi_reduction <add>, %1, %cst_6 [1] : vector<8x256xf32> to vector<8xf32>
    %12 = vector.shape_cast %11 : vector<8xf32> to vector<8x1xf32>
    %cst_7 = arith.constant 2.560000e+02 : f32
    %13 = vector.broadcast %cst_7 : f32 to vector<8x1xf32>
    %14 = arith.divf %12, %13 : vector<8x1xf32>
    %15 = arith.addf %2, %14 : vector<8x1xf32>
    %16 = arith.mulf %15, %10 : vector<8x1xf32>
    %17 = arith.mulf %0, %7 : vector<8x256xf32>
    %18 = vector.broadcast %16 : vector<8x1xf32> to vector<8x256xf32>
    %19 = arith.mulf %17, %18 : vector<8x256xf32>
    %c0_8 = arith.constant 0 : index
    %c0_9 = arith.constant 0 : index
    %20 = vector.load %arg4[%c0_8, %c0_9] : memref<8x256xf32, #tpu.memory_space<vmem>>, vector<8x256xf32>
    tpu.vector_store %arg4[%c0_8, %c0_9], %19 {strides = array<i32>} : memref<8x256xf32, #tpu.memory_space<vmem>>, vector<8x256xf32>,
    return
  }
  func.func @transform_0(%arg0: i32) -> (i32, i32) {
    %c0_i32 = arith.constant 0 : i32
    %c0_i32_0 = arith.constant 0 : i32
    return %arg0, %c0_i32 : i32, i32
  }
  func.func @transform_1(%arg0: i32) -> (i32, i32) {
    %c0_i32 = arith.constant 0 : i32
    %c0_i32_0 = arith.constant 0 : i32
    return %arg0, %c0_i32 : i32, i32
  }
  func.func @transform_2(%arg0: i32) -> (i32, i32) {
    %c0_i32 = arith.constant 0 : i32
    %c0_i32_0 = arith.constant 0 : i32
    return %arg0, %c0_i32 : i32, i32
  }
  func.func @transform_3(%arg0: i32) -> (i32, i32) {
    %c0_i32 = arith.constant 0 : i32
    %c0_i32_0 = arith.constant 0 : i32
    return %arg0, %c0_i32 : i32, i32
  }
}

</mosaic_0001>

<bundles_post_ra>
// kernel: tpu_custom_call.1
= control target key start
LH: loop header
LB: loop body
LE: loop exit
PB: predicated region body
PF: predicated region fallthrough
CT: control target
= control target key end

     0   :  { %8 = vsyncpa [#allocation3], 0  ;;  %s238_s0 = inlined_call_operand.hbm [shape: f32[8,256], index: 0, kind: input, shape index: {}]   ;;  %s239_s1 = inlined_call_operand.hbm [shape: f32[8,256], index: 1, kind: input, shape index: {}]   ;;  %s240_s2 = inlined_call_operand.vmem [shape: f32[8,1], index: 2, kind: input, shape index: {}]   ;;  %s241_s3 = inlined_call_operand.hbm [shape: f32[8,256], index: 3, kind: output, shape index: {}]  }
   0x1   :  { %9 = vsyncpa [#allocation6], 0 }
   0x2   :  { %10 = vsyncpa [#allocation4], 0  ;;  %s175_s12 = smov [#allocation2]   ;;  %s176_s14 = smov [#allocation5]  }
   0x3   :  { %s17_s13 = sshll.u32 %s175_s12, 4  ;;  %s27_s15 = sshll.u32 %s176_s14, 4  ;;  %s18_s13 = int_to_ptr.vmem [resolvable:$true] %s17_s13  ;;  %s28_s15 = int_to_ptr.vmem [resolvable:$true] %s27_s15 }
   0x4   :  { %s103_s18 = scalar_lea.hbm %s238_s0, 256 }
   0x5   :  { %p104_p0 = scmp.ne.s32.totalorder %s238_s0, %s103_s18  ;;  %p107_p1 = scmp.lt.u32.totalorder %s103_s18, %s238_s0 }
   0x7   :  { %p109_p2 = pnand %p107_p1, %p104_p0 }
   0x9   :  { %112 = shalt.err (!%p109_p2)
}
   0xa   :  { %s113_s23 = scalar_lea.vmem %s18_s13, 256  ;;  %p118_p4 = scmp.lt.s32.totalorder %s18_s13, %s18_s13 }
   0xb   :  { %p114_p3 = scmp.ne.s32.totalorder %s18_s13, %s113_s23  ;;  %p119_p5 = scmp.lt.s32.totalorder %s113_s23, %s113_s23 }
   0xd   :  { %p120_p6 = por %p119_p5, %p118_p4 }
   0xf   :  { %p121_p7 = pnand %p120_p6, %p114_p3 }
  0x11   :  { %124 = shalt.err (!%p121_p7)
}
  0x12   :  { %20 = dma.hbm_to_vmem [thread:$0]  %s238_s0, 256, %s18_s13, [#allocation3]  }
  0x13   :  { %s125_s28 = scalar_lea.hbm %s239_s1, 256 }
  0x14   :  { %p126_p8 = scmp.ne.s32.totalorder %s239_s1, %s125_s28  ;;  %p129_p9 = scmp.lt.u32.totalorder %s125_s28, %s239_s1 }
  0x16   :  { %p131_p10 = pnand %p129_p9, %p126_p8 }
  0x18   :  { %134 = shalt.err (!%p131_p10)
}
  0x19   :  { %s135_s6 = scalar_lea.vmem %s28_s15, 256  ;;  %p140_p12 = scmp.lt.s32.totalorder %s28_s15, %s28_s15 }
  0x1a   :  { %p136_p11 = scmp.ne.s32.totalorder %s28_s15, %s135_s6  ;;  %p141_p13 = scmp.lt.s32.totalorder %s135_s6, %s135_s6 }
  0x1c   :  { %p142_p0 = por %p141_p13, %p140_p12 }
  0x1e   :  { %p143_p1 = pnand %p142_p0, %p136_p11 }
  0x20   :  { %146 = shalt.err (!%p143_p1)
}
  0x21   :  { %30 = dma.hbm_to_vmem [thread:$0]  %s239_s1, 256, %s28_s15, [#allocation6]  }
  0x22   :  { %169 = dma.done.wait [#allocation3], 256  }
  0x23   :  { %170 = vsyncadd [#allocation3], 4294967040 }
  0x24   :  { %171 = dma.done.wait [#allocation6], 256  }
  0x25   :  { %172 = vsyncadd [#allocation6], 4294967040  ;;  %v41_v0 = vld [vmem:[#allocation5] sm:$0xff]  ;;  %v42_v1 = vld [vmem:[#allocation5 + $0x8] sm:$0xff]  ;;  %v177_v12 = vmov 0   ;;  %s178_s9 = smov [#allocation7]  }
  0x26   :  { %v44_v2 = vmax.f32 %v41_v0, %v42_v1  ;;  %v57_v3 = vadd.f32 %v42_v1, %v41_v0  ;;  %95 = vset.pattern.permute.xlu1 %v177_v12  ;;  %96 = vset.pattern.permute.xlu0 %v177_v12  ;;  %v43_v16 = vld [vmem:[%s240_s2] sm:$0xff]  ;;  %v40_v21 = vld [vmem:[#allocation2 + $0x8] sm:$0xff]  ;;  %s81_s10 = sshll.u32 %s178_s9, 4  ;;  %s82_s10 = int_to_ptr.vmem [resolvable:$true] %s81_s10 }
  0x27   :  { %v39_v20 = vld [vmem:[#allocation2] sm:$0xff]  ;;  %s147_s11 = scalar_lea.vmem %s82_s10, 256  ;;  %p152_p3 = scmp.lt.s32.totalorder %s82_s10, %s82_s10 }
  0x28   :  { %45 = vmax.xlane.f32.xlu0 %v44_v2  ;;  %58 = vadd.xlane.f32.xlu1 %v57_v3  ;;  %p148_p2 = scmp.ne.s32.totalorder %s82_s10, %s147_s11  ;;  %p153_p4 = scmp.lt.s32.totalorder %s147_s11, %s147_s11 }
  0x2a   :  { %p154_p5 = por %p153_p4, %p152_p3 }
  0x2c   :  { %p155_p6 = pnand %p154_p5, %p148_p2 }
  0xb5   :  { %v46_v4 = vpop.xlane.xlu0 %45  ;;  %v59_v14 = vpop.xlane.xlu1 %58 }
  0xb6   :  { %v47_v5 = vsub.f32 %v41_v0, %v46_v4  ;;  %v48_v6 = vsub.f32 %v42_v1, %v46_v4  ;;  %v61_v15 = vmul.f32 0.00390625, %v59_v14 }
  0xb8   :  { %v49_v7 = vmul.f32 1.442695, %v47_v5  ;;  %v51_v8 = vmul.f32 1.442695, %v48_v6  ;;  %v62_v17 = vadd.f32 %v61_v15, %v43_v16 }
  0xba   :  { %97 = vpow2.f32 %v49_v7 }
  0xbb   :  { %99 = vpow2.f32 %v51_v8 }
  0xc4   :  { %v98_v9 = vpop.eup %97 }
  0xc5   :  { %v100_v10 = vpop.eup %99  ;;  %v64_v22 = vmul.f32 %v98_v9, %v39_v20 }
  0xc6   :  { %v53_v11 = vadd.f32 %v100_v10, %v98_v9  ;;  %v65_v23 = vmul.f32 %v100_v10, %v40_v21 }
  0xc8   :  { %54 = vadd.xlane.f32.xlu0 %v53_v11 }
 0x155   :  { %v55_v13 = vpop.xlane.xlu0 %54 }
 0x156   :  { %101 = vrcp.f32 %v55_v13 }
 0x160   :  { %v102_v18 = vpop.eup %101 }
 0x161   :  { %v63_v19 = vmul.f32 %v102_v18, %v62_v17 }
 0x163   :  { %68 = vperm.xlu1 %95, %v63_v19  }
 0x1e2   :  { %v69_v24 = vpop.permute.xlu1 %68 }
 0x1e3   :  { %v71_v25 = vmul.f32 %v69_v24, %v64_v22  ;;  %v72_v26 = vmul.f32 %v69_v24, %v65_v23 }
 0x1e5   :  { %73 = vst [vmem:[#allocation7] sm:$0xff] %v71_v25  ;;  %74 = vst [vmem:[#allocation7 + $0x8] sm:$0xff] %v72_v26 }
 0x1e6   :  { %158 = shalt.err (!%p155_p6)
}
 0x1e7   :  { %s159_s13 = scalar_lea.hbm %s241_s3, 256 }
 0x1e8   :  { %p160_p7 = scmp.ne.s32.totalorder %s241_s3, %s159_s13  ;;  %p163_p8 = scmp.lt.u32.totalorder %s159_s13, %s241_s3 }
 0x1ea   :  { %p165_p9 = pnand %p163_p8, %p160_p7 }
 0x1ec   :  { %168 = shalt.err (!%p165_p9)
}
 0x1ed   :  { %84 = dma.vmem_to_hbm [thread:$0]  %s82_s10, 256, %s241_s3, [#allocation4]  }
 0x1ee   :  { %173 = dma.done.wait [#allocation4], 256  }
 0x1ef   :  { %174 = vsyncadd [#allocation4], 4294967040 }
 0x1f0   :  { %88 = vsyncpa [#allocation3], 1 }
 0x1f1   :  { %89 = vsyncpa [#allocation6], 1 }
 0x1f2   :  { %90 = vsyncpa [#allocation4], 1 }

</bundles_post_ra>
